<compile_context>
chip_gen: v7x
topology: tpu7x:2x2x1
jax: 0.10.0
libtpu: 0.0.40
codegen_flags: <defaults>
</compile_context>

<pallas_src>
import jax
import jax.numpy as jnp
from jax import lax
from jax.experimental import pallas as pl
from jax.experimental.pallas import tpu as pltpu


_TARGET_TILE_BYTES = 2 * 1024 * 1024   # budget for one activation tile (+ f32 temp)
_EPS = 1e-5


# ---------------------------------------------------------------------------
# Pallas kernel
# ---------------------------------------------------------------------------

def _biasfree_layernorm_kernel(x_ref, w_ref, o_ref):
    """x_ref: (bm, C), w_ref: (1, C), o_ref: (bm, C)."""
    x = x_ref[...].astype(jnp.float32)
    w = w_ref[...].astype(jnp.float32)                    # (1, C), broadcast over rows
    inv_c = jnp.float32(1.0 / x.shape[-1])
    s1 = jnp.sum(x, axis=-1, keepdims=True) * inv_c       # E[x]
    s2 = jnp.sum(x * x, axis=-1, keepdims=True) * inv_c   # E[x^2]  (single pass over x)
    var = jnp.maximum(s2 - s1 * s1, 0.0)                  # unbiased=False; clamp cancellation
    y = x * (lax.rsqrt(var + _EPS) * w)                   # bias-free: scale raw x (EUP rsqrt)
    o_ref[...] = y.astype(o_ref.dtype)


# ---------------------------------------------------------------------------
# Tiling / VMEM sizing helpers
# ---------------------------------------------------------------------------

def _sublane_multiple(dtype):
    bits = jnp.dtype(dtype).itemsize * 8
    if bits >= 32:
        return 8
    if bits == 16:
        return 16
    return 32


def _round_up(a, b):
    return ((a + b - 1) // b) * b


def _choose_tiling(M, C, dtype):
    """Pick (bm, grid, padded_M): VMEM-budget tile height, dtype-aware, even grid."""
    sub = _sublane_multiple(dtype)
    itemsize = jnp.dtype(dtype).itemsize
    bytes_per_row = C * (itemsize + 4)                 # native tile + its f32 upcast copy
    bm = max(sub, (_TARGET_TILE_BYTES // bytes_per_row) // sub * sub)
    bm = min(bm, _round_up(M, sub))                    # never taller than (padded) M
    grid = pl.cdiv(M, bm)
    if grid == 1 and M > sub:                          # split so both v7x cores get work
        bm = _round_up(pl.cdiv(M, 2), sub)
        grid = pl.cdiv(M, bm)
    if grid > 1 and grid % 2 == 1:                     # even grid -> balanced megacore
        grid += 1
    return bm, grid, bm * grid


def _vmem_limit_bytes(bm, C, itemsize):
    tile_native = bm * C * itemsize
    tile_f32 = bm * C * 4
    est = 4 * tile_native + 4 * tile_f32 + (2 << 20)   # in/out double-buffers + f32 temps
    return int(min(max(est, 24 << 20), 48 << 20))      # >= default scopes, < v7x 64 MiB


# ---------------------------------------------------------------------------
# Public wrapper — same forward semantics as the PyTorch module
# ---------------------------------------------------------------------------

def bias_free_layer_norm(x, weight):
    """Normalize over the last dim of x (any leading shape); weight: (C,)."""
    orig_shape = x.shape
    C = orig_shape[-1]
    M = 1
    for d in orig_shape[:-1]:
        M *= d

    xf = x.reshape(M, C)
    w2 = weight.reshape(1, C)

    bm, grid, m_pad = _choose_tiling(M, C, x.dtype)
    if m_pad != M:
        xf = jnp.pad(xf, ((0, m_pad - M), (0, 0)))     # zero rows -> finite, discarded output

    yf = pl.pallas_call(
        _biasfree_layernorm_kernel,
        out_shape=jax.ShapeDtypeStruct((m_pad, C), x.dtype),
        grid_spec=pltpu.PrefetchScalarGridSpec(
            num_scalar_prefetch=0,
            grid=(grid,),
            in_specs=[
                pl.BlockSpec((bm, C), lambda i: (i, 0)),   # activation tile (full row in lane axis)
                pl.BlockSpec((1, C), lambda i: (0, 0)),    # weight: same block every step (no re-DMA)
            ],
            out_specs=pl.BlockSpec((bm, C), lambda i: (i, 0)),
        ),
        compiler_params=pltpu.CompilerParams(
            dimension_semantics=("parallel",),             # megacore sharding on v7x
            vmem_limit_bytes=_vmem_limit_bytes(bm, C, jnp.dtype(x.dtype).itemsize),
        ),
    )(xf, w2)

    if m_pad != M:
        yf = yf[:M]
    return yf.reshape(orig_shape)


# ---------------------------------------------------------------------------
# Driver
# ---------------------------------------------------------------------------

if __name__ == "__main__":
    key = jax.random.PRNGKey(0)
    k1, k2 = jax.random.split(key)

    # Restormer-style usage: LayerNorm is applied to the to_3d view (B, H*W, C)
    # with normalized_shape = C.  Small demo shapes: batch=2, spatial=16x16, C=64.
    B, H, W, C = 2, 16, 16, 64
    x = jax.random.normal(k1, (B, H * W, C), jnp.float32)
    weight = 1.0 + 0.1 * jax.random.normal(k2, (C,), jnp.float32)

    out = jax.jit(bias_free_layer_norm)(x, weight)
    jax.block_until_ready(out)

    # Pure-JAX reference (matches torch: var(-1, unbiased=False), no mean subtraction)
    mu = jnp.mean(x, axis=-1, keepdims=True)
    var = jnp.mean((x - mu) ** 2, axis=-1, keepdims=True)
    ref = x / jnp.sqrt(var + 1e-5) * weight

    assert out.shape == x.shape and out.dtype == x.dtype
    assert bool(jnp.allclose(out, ref, atol=1e-5, rtol=1e-5))
    print("KERNEL_OK")
</pallas_src>

<mosaic_0001>
module attributes {stable_mosaic.version = 11 : i64} {
  func.func @_biasfree_layernorm_kernel(%arg0: i32, %arg1: memref<256x64xf32, #tpu.memory_space<vmem>>, %arg2: memref<1x64xf32, #tpu.memory_space<vmem>>, %arg3: memref<256x64xf32, #tpu.memory_space<vmem>>) attributes {dimension_semantics = [#tpu.dimension_semantics<parallel>], iteration_bounds = array<i64: 2>, scalar_prefetch = 0 : i64, scratch_operands = 0 : i64, tpu.core_type = #tpu.core_type<tc>, window_params = [{transform_indices = @transform_0, window_bounds = array<i64: 256, 64>}, {pipeline_mode = #tpu.pipeline_mode<synchronous>, transform_indices = @transform_1, window_bounds = array<i64: 1, 64>}, {transform_indices = @transform_2, window_bounds = array<i64: 256, 64>}]} {
    %c0 = arith.constant 0 : index
    %c0_0 = arith.constant 0 : index
    %0 = vector.load %arg1[%c0, %c0_0] : memref<256x64xf32, #tpu.memory_space<vmem>>, vector<256x64xf32>
    %c0_1 = arith.constant 0 : index
    %c0_2 = arith.constant 0 : index
    %1 = vector.load %arg2[%c0_1, %c0_2] : memref<1x64xf32, #tpu.memory_space<vmem>>, vector<1x64xf32>
    %cst = arith.constant dense<0.000000e+00> : vector<256xf32>
    %2 = vector.multi_reduction <add>, %0, %cst [1] : vector<256x64xf32> to vector<256xf32>
    %3 = vector.shape_cast %2 : vector<256xf32> to vector<256x1xf32>
    %cst_3 = arith.constant 1.562500e-02 : f32
    %4 = vector.broadcast %cst_3 : f32 to vector<256x1xf32>
    %5 = arith.mulf %3, %4 : vector<256x1xf32>
    %6 = arith.mulf %0, %0 : vector<256x64xf32>
    %cst_4 = arith.constant dense<0.000000e+00> : vector<256xf32>
    %7 = vector.multi_reduction <add>, %6, %cst_4 [1] : vector<256x64xf32> to vector<256xf32>
    %8 = vector.shape_cast %7 : vector<256xf32> to vector<256x1xf32>
    %cst_5 = arith.constant 1.562500e-02 : f32
    %9 = vector.broadcast %cst_5 : f32 to vector<256x1xf32>
    %10 = arith.mulf %8, %9 : vector<256x1xf32>
    %11 = arith.mulf %5, %5 : vector<256x1xf32>
    %12 = arith.subf %10, %11 : vector<256x1xf32>
    %cst_6 = arith.constant 0.000000e+00 : f32
    %13 = vector.broadcast %cst_6 : f32 to vector<256x1xf32>
    %14 = arith.maximumf %12, %13 : vector<256x1xf32>
    %cst_7 = arith.constant 9.99999974E-6 : f32
    %15 = vector.broadcast %cst_7 : f32 to vector<256x1xf32>
    %16 = arith.addf %14, %15 : vector<256x1xf32>
    %17 = math.rsqrt %16 : vector<256x1xf32>
    %18 = vector.broadcast %17 : vector<256x1xf32> to vector<256x64xf32>
    %19 = vector.broadcast %1 : vector<1x64xf32> to vector<256x64xf32>
    %20 = arith.mulf %18, %19 : vector<256x64xf32>
    %21 = arith.mulf %0, %20 : vector<256x64xf32>
    %c0_8 = arith.constant 0 : index
    %c0_9 = arith.constant 0 : index
    %22 = vector.load %arg3[%c0_8, %c0_9] : memref<256x64xf32, #tpu.memory_space<vmem>>, vector<256x64xf32>
    tpu.vector_store %arg3[%c0_8, %c0_9], %21 {strides = array<i32>} : memref<256x64xf32, #tpu.memory_space<vmem>>, vector<256x64xf32>,
    return
  }
  func.func @transform_0(%arg0: i32) -> (i32, i32) {
    %c0_i32 = arith.constant 0 : i32
    %c0_i32_0 = arith.constant 0 : i32
    return %arg0, %c0_i32 : i32, i32
  }
  func.func @transform_1(%arg0: i32) -> (i32, i32) {
    %c0_i32 = arith.constant 0 : i32
    %c0_i32_0 = arith.constant 0 : i32
    %c0_i32_1 = arith.constant 0 : i32
    return %c0_i32, %c0_i32_0 : i32, i32
  }
  func.func @transform_2(%arg0: i32) -> (i32, i32) {
    %c0_i32 = arith.constant 0 : i32
    %c0_i32_0 = arith.constant 0 : i32
    return %arg0, %c0_i32 : i32, i32
  }
}

</mosaic_0001>

<bundles_post_ra>
// kernel: bias_free_layer_norm.1
= control target key start
LH: loop header
LB: loop body
LE: loop exit
PB: predicated region body
PF: predicated region fallthrough
CT: control target
= control target key end

     0   :  { %s901_s9 = smov 0   ;;  %s1426_s0 = inlined_call_operand.vmem [shape: f32[512,64], index: 0, kind: input, shape index: {}]   ;;  %s1427_s1 = inlined_call_operand.vmem [shape: f32[1,64], index: 1, kind: input, shape index: {}]   ;;  %s1428_s2 = inlined_call_operand.vmem [shape: f32[512,64], index: 2, kind: output, shape index: {}]  }
   0x1 LB: > { %s787_s10 = sadd.s32 4294967295, %s884_s9   ;;  %p791_p0 = scmp.ge.s32.totalorder %s884_s9, 1  ;;  %s884_s9 = sphi %s901_s9, %s12_s9  }
   0x2   : > { %p113_p1 = scmp.lt.s32.totalorder %s884_s9, 3 }
   0x4   : > { %p114_p2 = pnand %p791_p0, %p113_p1 }
   0x6   : > { %117 = sbr.rel (%p114_p2) target bundleno = 312 (0x138), region = 28 }
   0xd   : > { %s792_s11 = sshll.u32 %s787_s10, 5  ;;  %vm180_vm0 = vcmask 523264  }
   0xe   : > { %p136_p3 = scmp.lt.s32.totalorder %s792_s11, 63 }
  0x10   : > { %s1472_s11 = smov (!%p136_p3, %s792_s11), 63 }
  0x11   : > { %s793_s12 = sshll.u32 %s1472_s11, 3 }
  0x12   : > { %s917_s15 = scalar_lea.vmem %s1426_s0, %s793_s12  ;;  %s1254_s20 = scalar_lea.vmem %s1428_s2, %s793_s12 }
  0x13   : > { %v920_v0 = vld [vmem:[%s917_s15 + $0x10] sm:$0xff]  ;;  %v923_v1 = vld [vmem:[%s917_s15] sm:$0xff]  ;;  %v926_v2 = vld [vmem:[%s917_s15 + $0x18] sm:$0xff] }
  0x14   : > { %v187_v3 = vsel %vm180_vm0, %v920_v0, 0.0  ;;  %v181_v4 = vsel %vm180_vm0, %v923_v1, 0.0  ;;  %v933_v5 = vld [vmem:[%s917_s15 + $0x8] sm:$0xff]  ;;  %v190_v6 = vsel %vm180_vm0, %v926_v2, 0.0  ;;  %v943_v9 = vld [vmem:[%s917_s15 + $0x20] sm:$0xff]  ;;  %v950_v12 = vld [vmem:[%s917_s15 + $0x38] sm:$0xff] }
  0x15   : > { %188 = vadd.xlane.f32.xlu1 %v187_v3  ;;  %182 = vadd.xlane.f32.xlu0 %v181_v4  ;;  %v184_v7 = vsel %vm180_vm0, %v933_v5, 0.0  ;;  %v940_v8 = vld [vmem:[%s917_s15 + $0x28] sm:$0xff]  ;;  %v193_v11 = vsel %vm180_vm0, %v943_v9, 0.0  ;;  %v953_v13 = vld [vmem:[%s917_s15 + $0x30] sm:$0xff]  ;;  %v202_v14 = vsel %vm180_vm0, %v950_v12, 0.0  ;;  %v963_v17 = vld [vmem:[%s917_s15 + $0x40] sm:$0xff]  ;;  %v310_v3 = vmul.f32 %v933_v5, %v933_v5 }
  0x16   : > { %v196_v10 = vsel %vm180_vm0, %v940_v8, 0.0  ;;  %v199_v15 = vsel %vm180_vm0, %v953_v13, 0.0  ;;  %v960_v16 = vld [vmem:[%s917_s15 + $0x48] sm:$0xff]  ;;  %v205_v19 = vsel %vm180_vm0, %v963_v17, 0.0  ;;  %v970_v20 = vld [vmem:[%s917_s15 + $0x58] sm:$0xff]  ;;  %v973_v21 = vld [vmem:[%s917_s15 + $0x50] sm:$0xff]  ;;  %v309_v4 = vmul.f32 %v923_v1, %v923_v1 }
  0x17   : > { %v208_v18 = vsel %vm180_vm0, %v960_v16, 0.0  ;;  %v214_v22 = vsel %vm180_vm0, %v970_v20, 0.0  ;;  %v211_v23 = vsel %vm180_vm0, %v973_v21, 0.0  ;;  %v980_v24 = vld [vmem:[%s917_s15 + $0x68] sm:$0xff]  ;;  %v983_v25 = vld [vmem:[%s917_s15 + $0x60] sm:$0xff]  ;;  %v990_v28 = vld [vmem:[%s917_s15 + $0x78] sm:$0xff] }
  0x18   : > { %1441 = vst [vmem:[#allocation2_spill] sm:$0xff] %v983_v25  ;;  %v220_v26 = vsel %vm180_vm0, %v980_v24, 0.0  ;;  %v217_v27 = vsel %vm180_vm0, %v983_v25, 0.0  ;;  %1442 = vst [vmem:[#allocation3_spill] sm:$0xff] %v990_v28  ;;  %v993_v29 = vld [vmem:[%s917_s15 + $0x70] sm:$0xff]  ;;  %v226_v30 = vsel %vm180_vm0, %v990_v28, 0.0 }
  0x19   : > { %191 = vadd.xlane.f32.xlu1 %v190_v6  ;;  %185 = vadd.xlane.f32.xlu0 %v184_v7  ;;  %1443 = vst [vmem:[#allocation4_spill] sm:$0xff] %v993_v29  ;;  %v223_v31 = vsel %vm180_vm0, %v993_v29, 0.0  ;;  %v1000_v32 = vld [vmem:[%s917_s15 + $0x88] sm:$0xff]  ;;  %v1003_v33 = vld [vmem:[%s917_s15 + $0x80] sm:$0xff]  ;;  %v1010_v36 = vld [vmem:[%s917_s15 + $0x98] sm:$0xff]  ;;  %v344_v6 = vsel %vm180_vm0, %v310_v3, 0.0 }
  0x1a   : > { %1444 = vst [vmem:[#allocation5_spill] sm:$0xff] %v1000_v32  ;;  %1445 = vst [vmem:[#allocation6_spill] sm:$0xff] %v1003_v33  ;;  %v232_v34 = vsel %vm180_vm0, %v1000_v32, 0.0  ;;  %v229_v35 = vsel %vm180_vm0, %v1003_v33, 0.0  ;;  %v1013_v37 = vld [vmem:[%s917_s15 + $0x90] sm:$0xff]  ;;  %v238_v38 = vsel %vm180_vm0, %v1010_v36, 0.0  ;;  %v326_v3 = vmul.f32 %v1000_v32, %v1000_v32 }
  0x1b   : > { %1446 = vst [vmem:[#allocation7_spill] sm:$0xff] %v1010_v36  ;;  %1447 = vst [vmem:[#allocation8_spill] sm:$0xff] %v1013_v37  ;;  %v235_v39 = vsel %vm180_vm0, %v1013_v37, 0.0  ;;  %v1020_v40 = vld [vmem:[%s917_s15 + $0xa8] sm:$0xff]  ;;  %v1023_v41 = vld [vmem:[%s917_s15 + $0xa0] sm:$0xff]  ;;  %v341_v7 = vsel %vm180_vm0, %v309_v4, 0.0  ;;  %v325_v4 = vmul.f32 %v1003_v33, %v1003_v33 }
  0x1c   : > { %1448 = vst [vmem:[#allocation9_spill] sm:$0xff] %v1020_v40  ;;  %1449 = vst [vmem:[#allocation10_spill] sm:$0xff] %v1023_v41  ;;  %v244_v42 = vsel %vm180_vm0, %v1020_v40, 0.0  ;;  %v241_v43 = vsel %vm180_vm0, %v1023_v41, 0.0  ;;  %v1030_v44 = vld [vmem:[%s917_s15 + $0xb8] sm:$0xff]  ;;  %v1033_v45 = vld [vmem:[%s917_s15 + $0xb0] sm:$0xff] }
  0x1d   : > { %197 = vadd.xlane.f32.xlu1 %v196_v10  ;;  %194 = vadd.xlane.f32.xlu0 %v193_v11  ;;  %1450 = vst [vmem:[#allocation11_spill] sm:$0xff] %v1030_v44  ;;  %1451 = vst [vmem:[#allocation12_spill] sm:$0xff] %v1033_v45  ;;  %v250_v46 = vsel %vm180_vm0, %v1030_v44, 0.0  ;;  %v247_v47 = vsel %vm180_vm0, %v1033_v45, 0.0  ;;  %v1040_v48 = vld [vmem:[%s917_s15 + $0xc8] sm:$0xff]  ;;  %v1043_v49 = vld [vmem:[%s917_s15 + $0xc0] sm:$0xff]  ;;  %v312_v10 = vmul.f32 %v926_v2, %v926_v2 }
  0x1e   : > { %1452 = vst [vmem:[#allocation13_spill] sm:$0xff] %v1040_v48  ;;  %v256_v50 = vsel %vm180_vm0, %v1040_v48, 0.0  ;;  %v253_v51 = vsel %vm180_vm0, %v1043_v49, 0.0  ;;  %v1050_v52 = vld [vmem:[%s917_s15 + $0xd8] sm:$0xff]  ;;  %v1053_v53 = vld [vmem:[%s917_s15 + $0xd0] sm:$0xff]  ;;  %v1060_v56 = vld [vmem:[%s917_s15 + $0xe8] sm:$0xff]  ;;  %v311_v11 = vmul.f32 %v920_v0, %v920_v0 }
  0x1f   : > { %v262_v54 = vsel %vm180_vm0, %v1050_v52, 0.0  ;;  %v259_v55 = vsel %vm180_vm0, %v1053_v53, 0.0  ;;  %v1063_v57 = vld [vmem:[%s917_s15 + $0xe0] sm:$0xff]  ;;  %v268_v58 = vsel %vm180_vm0, %v1060_v56, 0.0  ;;  %v1070_v60 = vld [vmem:[%s917_s15 + $0xf8] sm:$0xff]  ;;  %v1073_v61 = vld [vmem:[%s917_s15 + $0xf0] sm:$0xff] }
  0x20   : > { %v265_v59 = vsel %vm180_vm0, %v1063_v57, 0.0  ;;  %v274_v62 = vsel %vm180_vm0, %v1070_v60, 0.0  ;;  %v271_v63 = vsel %vm180_vm0, %v1073_v61, 0.0 }
  0x21   : > { %203 = vadd.xlane.f32.xlu1 %v202_v14  ;;  %200 = vadd.xlane.f32.xlu0 %v199_v15  ;;  %v350_v14 = vsel %vm180_vm0, %v312_v10, 0.0  ;;  %v347_v15 = vsel %vm180_vm0, %v311_v11, 0.0  ;;  %v328_v10 = vmul.f32 %v1010_v36, %v1010_v36  ;;  %v327_v11 = vmul.f32 %v1013_v37, %v1013_v37 }
  0x25   : > { %209 = vadd.xlane.f32.xlu1 %v208_v18  ;;  %206 = vadd.xlane.f32.xlu0 %v205_v19  ;;  %v314_v18 = vmul.f32 %v940_v8, %v940_v8  ;;  %v313_v19 = vmul.f32 %v943_v9, %v943_v9 }
  0x29   : > { %215 = vadd.xlane.f32.xlu1 %v214_v22  ;;  %212 = vadd.xlane.f32.xlu0 %v211_v23  ;;  %v356_v22 = vsel %vm180_vm0, %v314_v18, 0.0  ;;  %v353_v23 = vsel %vm180_vm0, %v313_v19, 0.0  ;;  %v330_v18 = vmul.f32 %v1020_v40, %v1020_v40  ;;  %v329_v19 = vmul.f32 %v1023_v41, %v1023_v41 }
  0x2d   : > { %221 = vadd.xlane.f32.xlu1 %v220_v26  ;;  %218 = vadd.xlane.f32.xlu0 %v217_v27  ;;  %v316_v26 = vmul.f32 %v950_v12, %v950_v12  ;;  %v315_v27 = vmul.f32 %v953_v13, %v953_v13 }
  0x31   : > { %227 = vadd.xlane.f32.xlu1 %v226_v30  ;;  %224 = vadd.xlane.f32.xlu0 %v223_v31  ;;  %v362_v30 = vsel %vm180_vm0, %v316_v26, 0.0  ;;  %v359_v31 = vsel %vm180_vm0, %v315_v27, 0.0  ;;  %v332_v26 = vmul.f32 %v1030_v44, %v1030_v44  ;;  %v331_v27 = vmul.f32 %v1033_v45, %v1033_v45 }
  0x35   : > { %233 = vadd.xlane.f32.xlu1 %v232_v34  ;;  %230 = vadd.xlane.f32.xlu0 %v229_v35  ;;  %v318_v34 = vmul.f32 %v960_v16, %v960_v16  ;;  %v317_v35 = vmul.f32 %v963_v17, %v963_v17 }
  0x39   : > { %239 = vadd.xlane.f32.xlu1 %v238_v38  ;;  %236 = vadd.xlane.f32.xlu0 %v235_v39  ;;  %v368_v38 = vsel %vm180_vm0, %v318_v34, 0.0  ;;  %v365_v39 = vsel %vm180_vm0, %v317_v35, 0.0  ;;  %v334_v34 = vmul.f32 %v1040_v48, %v1040_v48  ;;  %v333_v35 = vmul.f32 %v1043_v49, %v1043_v49 }
  0x3a   : > { %v338_v49 = vmul.f32 %v1060_v56, %v1060_v56 }
  0x3d   : > { %245 = vadd.xlane.f32.xlu1 %v244_v42  ;;  %242 = vadd.xlane.f32.xlu0 %v241_v43  ;;  %v320_v42 = vmul.f32 %v970_v20, %v970_v20  ;;  %v319_v43 = vmul.f32 %v973_v21, %v973_v21 }
  0x41   : > { %251 = vadd.xlane.f32.xlu1 %v250_v46  ;;  %248 = vadd.xlane.f32.xlu0 %v247_v47  ;;  %v374_v46 = vsel %vm180_vm0, %v320_v42, 0.0  ;;  %v371_v47 = vsel %vm180_vm0, %v319_v43, 0.0  ;;  %v336_v42 = vmul.f32 %v1050_v52, %v1050_v52  ;;  %v335_v43 = vmul.f32 %v1053_v53, %v1053_v53 }
  0x42   : > { %v340_v53 = vmul.f32 %v1070_v60, %v1070_v60 }
  0x45   : > { %257 = vadd.xlane.f32.xlu1 %v256_v50  ;;  %254 = vadd.xlane.f32.xlu0 %v253_v51  ;;  %v322_v50 = vmul.f32 %v980_v24, %v980_v24  ;;  %v321_v51 = vmul.f32 %v983_v25, %v983_v25 }
  0x49   : > { %263 = vadd.xlane.f32.xlu1 %v262_v54  ;;  %260 = vadd.xlane.f32.xlu0 %v259_v55  ;;  %v380_v54 = vsel %vm180_vm0, %v322_v50, 0.0  ;;  %v377_v55 = vsel %vm180_vm0, %v321_v51, 0.0  ;;  %v337_v50 = vmul.f32 %v1063_v57, %v1063_v57  ;;  %v428_v51 = vsel %vm180_vm0, %v338_v49, 0.0 }
  0x4b   : > { %v425_v52 = vsel %vm180_vm0, %v337_v50, 0.0 }
  0x4d   : > { %269 = vadd.xlane.f32.xlu1 %v268_v58  ;;  %266 = vadd.xlane.f32.xlu0 %v265_v59  ;;  %v324_v58 = vmul.f32 %v990_v28, %v990_v28  ;;  %v323_v59 = vmul.f32 %v993_v29, %v993_v29 }
  0x51   : > { %275 = vadd.xlane.f32.xlu1 %v274_v62  ;;  %272 = vadd.xlane.f32.xlu0 %v271_v63  ;;  %v386_v62 = vsel %vm180_vm0, %v324_v58, 0.0  ;;  %v383_v63 = vsel %vm180_vm0, %v323_v59, 0.0 }
  0x55   : > { %345 = vadd.xlane.f32.xlu1 %v344_v6  ;;  %342 = vadd.xlane.f32.xlu0 %v341_v7  ;;  %v392_v6 = vsel %vm180_vm0, %v326_v3, 0.0  ;;  %v389_v7 = vsel %vm180_vm0, %v325_v4, 0.0 }
  0x59   : > { %351 = vadd.xlane.f32.xlu1 %v350_v14  ;;  %348 = vadd.xlane.f32.xlu0 %v347_v15  ;;  %v398_v14 = vsel %vm180_vm0, %v328_v10, 0.0  ;;  %v395_v15 = vsel %vm180_vm0, %v327_v11, 0.0 }
  0x5d   : > { %357 = vadd.xlane.f32.xlu1 %v356_v22  ;;  %354 = vadd.xlane.f32.xlu0 %v353_v23  ;;  %v404_v22 = vsel %vm180_vm0, %v330_v18, 0.0  ;;  %v401_v23 = vsel %vm180_vm0, %v329_v19, 0.0 }
  0x61   : > { %363 = vadd.xlane.f32.xlu1 %v362_v30  ;;  %360 = vadd.xlane.f32.xlu0 %v359_v31  ;;  %v410_v30 = vsel %vm180_vm0, %v332_v26, 0.0  ;;  %v407_v31 = vsel %vm180_vm0, %v331_v27, 0.0 }
  0x65   : > { %369 = vadd.xlane.f32.xlu1 %v368_v38  ;;  %366 = vadd.xlane.f32.xlu0 %v365_v39  ;;  %v416_v38 = vsel %vm180_vm0, %v334_v34, 0.0  ;;  %v413_v39 = vsel %vm180_vm0, %v333_v35, 0.0 }
  0x69   : > { %375 = vadd.xlane.f32.xlu1 %v374_v46  ;;  %372 = vadd.xlane.f32.xlu0 %v371_v47  ;;  %v422_v46 = vsel %vm180_vm0, %v336_v42, 0.0  ;;  %v419_v47 = vsel %vm180_vm0, %v335_v43, 0.0 }
  0x6d   : > { %381 = vadd.xlane.f32.xlu1 %v380_v54  ;;  %378 = vadd.xlane.f32.xlu0 %v377_v55  ;;  %v339_v54 = vmul.f32 %v1073_v61, %v1073_v61  ;;  %v434_v55 = vsel %vm180_vm0, %v340_v53, 0.0 }
  0x6f   : > { %v431_v56 = vsel %vm180_vm0, %v339_v54, 0.0 }
  0x71   : > { %387 = vadd.xlane.f32.xlu1 %v386_v62  ;;  %384 = vadd.xlane.f32.xlu0 %v383_v63 }
  0x75   : > { %393 = vadd.xlane.f32.xlu1 %v392_v6  ;;  %390 = vadd.xlane.f32.xlu0 %v389_v7 }
  0x79   : > { %399 = vadd.xlane.f32.xlu1 %v398_v14  ;;  %396 = vadd.xlane.f32.xlu0 %v395_v15 }
  0x7d   : > { %405 = vadd.xlane.f32.xlu1 %v404_v22  ;;  %402 = vadd.xlane.f32.xlu0 %v401_v23 }
  0x81   : > { %411 = vadd.xlane.f32.xlu1 %v410_v30  ;;  %408 = vadd.xlane.f32.xlu0 %v407_v31 }
  0x85   : > { %417 = vadd.xlane.f32.xlu1 %v416_v38  ;;  %414 = vadd.xlane.f32.xlu0 %v413_v39 }
  0x89   : > { %423 = vadd.xlane.f32.xlu1 %v422_v46  ;;  %420 = vadd.xlane.f32.xlu0 %v419_v47 }
  0x8d   : > { %429 = vadd.xlane.f32.xlu1 %v428_v51  ;;  %426 = vadd.xlane.f32.xlu0 %v425_v52 }
  0x91   : > { %435 = vadd.xlane.f32.xlu1 %v434_v55  ;;  %432 = vadd.xlane.f32.xlu0 %v431_v56 }
  0xa2   : > { %v189_v57 = vpop.xlane.xlu1 %188  ;;  %v183_v58 = vpop.xlane.xlu0 %182 }
  0xa3   : > { %v277_v50 = vmul.f32 0.015625, %v183_v58  ;;  %v279_v52 = vmul.f32 0.015625, %v189_v57 }
  0xa5   : > { %v469_v41 = vmul.f32 %v277_v50, %v277_v50  ;;  %v471_v33 = vmul.f32 %v279_v52, %v279_v52 }
  0xa6   : > { %v192_v59 = vpop.xlane.xlu1 %191  ;;  %v186_v62 = vpop.xlane.xlu0 %185 }
  0xa7   : > { %v278_v51 = vmul.f32 0.015625, %v186_v62  ;;  %v280_v53 = vmul.f32 0.015625, %v192_v59 }
  0xa9   : > { %v470_v40 = vmul.f32 %v278_v51, %v278_v51  ;;  %v472_v32 = vmul.f32 %v280_v53, %v280_v53 }
  0xaa   : > { %v198_v63 = vpop.xlane.xlu1 %197  ;;  %v195_v3 = vpop.xlane.xlu0 %194 }
  0xab   : > { %v282_v54 = vmul.f32 0.015625, %v198_v63  ;;  %v281_v55 = vmul.f32 0.015625, %v195_v3 }
  0xad   : > { %v473_v28 = vmul.f32 %v281_v55, %v281_v55 }
  0xae   : > { %v204_v4 = vpop.xlane.xlu1 %203  ;;  %v201_v6 = vpop.xlane.xlu0 %200 }
  0xaf   : > { %v284_v56 = vmul.f32 0.015625, %v204_v4  ;;  %v283_v48 = vmul.f32 0.015625, %v201_v6 }
  0xb1   : > { %v476_v62 = vmul.f32 %v284_v56, %v284_v56  ;;  %v475_v57 = vmul.f32 %v283_v48, %v283_v48 }
  0xb2   : > { %v210_v60 = vpop.xlane.xlu1 %209  ;;  %v207_v7 = vpop.xlane.xlu0 %206 }
  0xb3   : > { %v286_v29 = vmul.f32 0.015625, %v210_v60  ;;  %v285_v59 = vmul.f32 0.015625, %v207_v7 }
  0xb5   : > { %v1207_v51 = vmul.f32 %v286_v29, %v286_v29 }
  0xb6   : > { %v216_v10 = vpop.xlane.xlu1 %215  ;;  %v213_v61 = vpop.xlane.xlu0 %212 }
  0xb7   : > { %v288_v63 = vmul.f32 0.015625, %v216_v10 }
  0xba   : > { %v222_v11 = vpop.xlane.xlu1 %221  ;;  %v219_v14 = vpop.xlane.xlu0 %218 }
  0xbb   : > { %v289_v52 = vmul.f32 0.015625, %v219_v14 }
  0xbe   : > { %v228_v15 = vpop.xlane.xlu1 %227  ;;  %v225_v18 = vpop.xlane.xlu0 %224 }
  0xbf   : > { %v291_v48 = vmul.f32 0.015625, %v225_v18 }
  0xc2   : > { %v1175_v19 = vpop.xlane.xlu1 %233  ;;  %v1177_v22 = vpop.xlane.xlu0 %230 }
  0xc3   : > { %v294_v18 = vmul.f32 0.015625, %v1175_v19 }
  0xc6   : > { %v1179_v23 = vpop.xlane.xlu1 %239  ;;  %v1181_v26 = vpop.xlane.xlu0 %236 }
  0xca   : > { %v1183_v27 = vpop.xlane.xlu1 %245  ;;  %v1185_v30 = vpop.xlane.xlu0 %242 }
  0xcb   : > { %v297_v19 = vmul.f32 0.015625, %v1185_v30 }
  0xce   : > { %v1187_v31 = vpop.xlane.xlu1 %251  ;;  %v1189_v34 = vpop.xlane.xlu0 %248 }
  0xd2   : > { %v1191_v35 = vpop.xlane.xlu1 %257  ;;  %v1193_v38 = vpop.xlane.xlu0 %254 }
  0xd6   : > { %v1195_v39 = vpop.xlane.xlu1 %263  ;;  %v1197_v42 = vpop.xlane.xlu0 %260 }
  0xda   : > { %v1199_v43 = vpop.xlane.xlu1 %269  ;;  %v1201_v46 = vpop.xlane.xlu0 %266 }
  0xdb   : > { %1453 = vst [vmem:[#allocation14_spill] sm:$0xff] %v1201_v46 }
  0xde   : > { %v1203_v47 = vpop.xlane.xlu1 %275  ;;  %v1205_v49 = vpop.xlane.xlu0 %272 }
  0xdf   : > { %1454 = vst [vmem:[#allocation15_spill] sm:$0xff] %v1203_v47  ;;  %1455 = vst [vmem:[#allocation16_spill] sm:$0xff] %v1205_v49  ;;  %v474_v47 = vmul.f32 %v282_v54, %v282_v54 }
  0xe2   : > { %v346_v45 = vpop.xlane.xlu1 %345  ;;  %v343_v44 = vpop.xlane.xlu0 %342 }
  0xe3   : > { %v438_v37 = vmul.f32 0.015625, %v346_v45  ;;  %v437_v36 = vmul.f32 0.015625, %v343_v44  ;;  %v287_v44 = vmul.f32 0.015625, %v213_v61  ;;  %v290_v45 = vmul.f32 0.015625, %v222_v11 }
  0xe5   : > { %v502_v49 = vsub.f32 %v438_v37, %v470_v40  ;;  %v501_v58 = vsub.f32 %v437_v36, %v469_v41  ;;  %v1209_v36 = vmul.f32 %v285_v59, %v285_v59  ;;  %v1211_v40 = vmul.f32 %v288_v63, %v288_v63 }
  0xe6   : > { %v352_v3 = vpop.xlane.xlu1 %351  ;;  %v349_v4 = vpop.xlane.xlu0 %348  ;;  %v292_v41 = vmul.f32 0.015625, %v228_v15  ;;  %v1213_v56 = vmul.f32 %v287_v44, %v287_v44  ;;  %v1215_v61 = vmul.f32 %v290_v45, %v290_v45  ;;  %v1221_v15 = vmul.f32 %v291_v48, %v291_v48 }
  0xe7   : > { %v534_v6 = vmax.f32 %v502_v49, 0.0  ;;  %v533_v46 = vmax.f32 %v501_v58, 0.0  ;;  %v440_v25 = vmul.f32 0.015625, %v352_v3  ;;  %v439_v50 = vmul.f32 0.015625, %v349_v4 }
  0xe8   : > { %v296_v44 = vmul.f32 0.015625, %v1179_v23 }
  0xe9   : > { %v566_v60 = vadd.f32 1e-05, %v534_v6  ;;  %v565_v53 = vadd.f32 1e-05, %v533_v46  ;;  %v504_v54 = vsub.f32 %v440_v25, %v472_v32  ;;  %v503_v37 = vsub.f32 %v439_v50, %v471_v33 }
  0xea   : > { %v358_v7 = vpop.xlane.xlu1 %357  ;;  %v355_v10 = vpop.xlane.xlu0 %354  ;;  %v1217_v25 = vmul.f32 %v289_v52, %v289_v52  ;;  %v1219_v46 = vmul.f32 %v292_v41, %v292_v41  ;;  %v293_v50 = vmul.f32 0.015625, %v1177_v22  ;;  %v1234_v22 = vld [vmem:[%s1427_s1] ss:$0 sm:$0xff] }
  0xeb   : > { %807 = vrsqrt.f32 %v566_v60  ;;  %v536_v49 = vmax.f32 %v504_v54, 0.0  ;;  %v535_v55 = vmax.f32 %v503_v37, 0.0  ;;  %v442_v29 = vmul.f32 0.015625, %v358_v7 }
  0xec   : > { %809 = vrsqrt.f32 %v565_v53  ;;  %v441_v11 = vmul.f32 0.015625, %v355_v10  ;;  %v1227_v54 = vmul.f32 %v294_v18, %v294_v18 }
  0xed   : > { %v568_v32 = vadd.f32 1e-05, %v536_v49  ;;  %v567_v33 = vadd.f32 1e-05, %v535_v55  ;;  %v506_v14 = vsub.f32 %v442_v29, %v474_v47  ;;  %v295_v47 = vmul.f32 0.015625, %v1181_v26 }
  0xee   : > { %v505_v58 = vsub.f32 %v441_v11, %v473_v28  ;;  %v364_v59 = vpop.xlane.xlu1 %363  ;;  %v361_v63 = vpop.xlane.xlu0 %360  ;;  %v298_v28 = vmul.f32 0.015625, %v1183_v27 }
  0xef   : > { %811 = vrsqrt.f32 %v568_v32  ;;  %v538_v3 = vmax.f32 %v506_v14, 0.0  ;;  %v444_v4 = vmul.f32 0.015625, %v364_v59  ;;  %v443_v6 = vmul.f32 0.015625, %v361_v63 }
  0xf0   : > { %813 = vrsqrt.f32 %v567_v33  ;;  %v537_v45 = vmax.f32 %v505_v58, 0.0  ;;  %v1240_v10 = vmul.f32 %v295_v47, %v295_v47  ;;  %v1243_v32 = vmul.f32 %v298_v28, %v298_v28 }
  0xf1   : > { %v570_v52 = vadd.f32 1e-05, %v538_v3  ;;  %v508_v60 = vsub.f32 %v444_v4, %v476_v62  ;;  %v507_v53 = vsub.f32 %v443_v6, %v475_v57  ;;  %v1236_v62 = vmul.f32 %v293_v50, %v293_v50 }
  0xf2   : > { %v569_v37 = vadd.f32 1e-05, %v537_v45  ;;  %v370_v41 = vpop.xlane.xlu1 %369  ;;  %v367_v48 = vpop.xlane.xlu0 %366  ;;  %v1238_v57 = vmul.f32 %v296_v44, %v296_v44  ;;  %v1245_v33 = vmul.f32 %v297_v19, %v297_v19  ;;  %v300_v44 = vmul.f32 0.015625, %v1187_v31 }
  0xf3   : > { %815 = vrsqrt.f32 %v570_v52  ;;  %v540_v23 = vmax.f32 %v508_v60, 0.0  ;;  %v539_v26 = vmax.f32 %v507_v53, 0.0  ;;  %v446_v7 = vmul.f32 0.015625, %v370_v41 }
  0xf4   : > { %817 = vrsqrt.f32 %v569_v37  ;;  %v445_v27 = vmul.f32 0.015625, %v367_v48  ;;  %v299_v53 = vmul.f32 0.015625, %v1189_v34 }
  0xf5   : > { %v808_v30 = vpop.eup %807  ;;  %v572_v49 = vadd.f32 1e-05, %v540_v23  ;;  %v571_v55 = vadd.f32 1e-05, %v539_v26  ;;  %v510_v29 = vsub.f32 %v446_v7, %v1207_v51  ;;  %v1270_v7 = vmul.f32 %v300_v44, %v300_v44 }
  0xf6   : > { %v810_v11 = vpop.eup %809  ;;  %v636_v14 = vmul.f32 %v808_v30, %v1234_v22  ;;  %v509_v18 = vsub.f32 %v445_v27, %v1209_v36  ;;  %v376_v58 = vpop.xlane.xlu1 %375  ;;  %v301_v44 = vmul.f32 0.015625, %v1193_v38 }
  0xf7   : > { %v373_v59 = vpop.xlane.xlu0 %372  ;;  %v635_v51 = vmul.f32 %v810_v11, %v1234_v22  ;;  %819 = vrsqrt.f32 %v572_v49  ;;  %v542_v63 = vmax.f32 %v510_v29, 0.0  ;;  %v448_v3 = vmul.f32 0.015625, %v376_v58 }
  0xf8   : > { %v668_v4 = vmul.f32 %v636_v14, %v933_v5  ;;  %821 = vrsqrt.f32 %v571_v55  ;;  %v541_v6 = vmax.f32 %v509_v18, 0.0  ;;  %v447_v36 = vmul.f32 0.015625, %v373_v59 }
  0xf9   : > { %v812_v50 = vpop.eup %811  ;;  %v667_v45 = vmul.f32 %v635_v51, %v923_v1  ;;  %v574_v47 = vadd.f32 1e-05, %v542_v63  ;;  %v512_v52 = vsub.f32 %v448_v3, %v1211_v40  ;;  %v1274_v55 = vmul.f32 %v299_v53, %v299_v53 }
  0xfa   : > { %v814_v60 = vpop.eup %813  ;;  %700 = vst.msk [vmem:[%s1254_s20 + $0x8] sm:$0xff] %vm180_vm0, %v668_v4  ;;  %v638_v28 = vmul.f32 %v812_v50, %v1234_v22  ;;  %v573_v5 = vadd.f32 1e-05, %v541_v6  ;;  %v511_v19 = vsub.f32 %v447_v36, %v1213_v56  ;;  %v382_v37 = vpop.xlane.xlu1 %381  ;;  %v302_v4 = vmul.f32 0.015625, %v1191_v35 }
  0xfb   : > { %v379_v41 = vpop.xlane.xlu0 %378  ;;  %699 = vst.msk [vmem:[%s1254_s20] sm:$0xff] %vm180_vm0, %v667_v45  ;;  %v637_v1 = vmul.f32 %v814_v60, %v1234_v22  ;;  %823 = vrsqrt.f32 %v574_v47  ;;  %v544_v31 = vmax.f32 %v512_v52, 0.0  ;;  %v450_v40 = vmul.f32 0.015625, %v382_v37 }
  0xfc   : > { %v670_v48 = vmul.f32 %v638_v28, %v926_v2  ;;  %825 = vrsqrt.f32 %v573_v5  ;;  %v543_v34 = vmax.f32 %v511_v19, 0.0  ;;  %v449_v23 = vmul.f32 0.015625, %v379_v41 }
  0xfd   : > { %v816_v26 = vpop.eup %815  ;;  %v669_v56 = vmul.f32 %v637_v1, %v920_v0  ;;  %v576_v27 = vadd.f32 1e-05, %v544_v31  ;;  %v514_v30 = vsub.f32 %v450_v40, %v1215_v61  ;;  %v1296_v19 = vmul.f32 %v302_v4, %v302_v4 }
  0xfe   : > { %v818_v49 = vpop.eup %817  ;;  %702 = vst.msk [vmem:[%s1254_s20 + $0x18] sm:$0xff] %vm180_vm0, %v670_v48  ;;  %v640_v29 = vmul.f32 %v816_v26, %v1234_v22  ;;  %v575_v2 = vadd.f32 1e-05, %v543_v34  ;;  %v513_v11 = vsub.f32 %v449_v23, %v1217_v25  ;;  %v388_v14 = vpop.xlane.xlu1 %387  ;;  %v1300_v31 = vmul.f32 %v301_v44, %v301_v44 }
  0xff   : > { %v385_v18 = vpop.xlane.xlu0 %384  ;;  %701 = vst.msk [vmem:[%s1254_s20 + $0x10] sm:$0xff] %vm180_vm0, %v669_v56  ;;  %v639_v0 = vmul.f32 %v818_v49, %v1234_v22  ;;  %827 = vrsqrt.f32 %v576_v27  ;;  %v546_v58 = vmax.f32 %v514_v30, 0.0  ;;  %v452_v61 = vmul.f32 0.015625, %v388_v14 }
 0x100   : > { %v672_v59 = vmul.f32 %v640_v29, %v940_v8  ;;  %829 = vrsqrt.f32 %v575_v2  ;;  %v545_v51 = vmax.f32 %v513_v11, 0.0  ;;  %v451_v63 = vmul.f32 0.015625, %v385_v18 }
 0x101   : > { %v820_v3 = vpop.eup %819  ;;  %v671_v25 = vmul.f32 %v639_v0, %v943_v9  ;;  %v578_v6 = vadd.f32 1e-05, %v546_v58  ;;  %v516_v36 = vsub.f32 %v452_v61, %v1219_v46  ;;  %v304_v29 = vmul.f32 0.015625, %v1195_v39 }
 0x102   : > { %v822_v50 = vpop.eup %821  ;;  %704 = vst.msk [vmem:[%s1254_s20 + $0x28] sm:$0xff] %vm180_vm0, %v672_v59  ;;  %v642_v45 = vmul.f32 %v820_v3, %v1234_v22  ;;  %v577_v8 = vadd.f32 1e-05, %v545_v51  ;;  %v515_v47 = vsub.f32 %v451_v63, %v1221_v15  ;;  %v394_v52 = vpop.xlane.xlu1 %393  ;;  %v303_v18 = vmul.f32 0.015625, %v1197_v42 }
 0x103   : > { %v391_v60 = vpop.xlane.xlu0 %390  ;;  %703 = vst.msk [vmem:[%s1254_s20 + $0x20] sm:$0xff] %vm180_vm0, %v671_v25  ;;  %v641_v9 = vmul.f32 %v822_v50, %v1234_v22  ;;  %831 = vrsqrt.f32 %v578_v6  ;;  %v548_v35 = vmax.f32 %v516_v36, 0.0  ;;  %v454_v46 = vmul.f32 0.015625, %v394_v52 }
 0x104   : > { %v674_v53 = vmul.f32 %v642_v45, %v950_v12  ;;  %833 = vrsqrt.f32 %v577_v8  ;;  %v547_v38 = vmax.f32 %v515_v47, 0.0  ;;  %v453_v28 = vmul.f32 0.015625, %v391_v60 }
 0x105   : > { %v824_v5 = vpop.eup %823  ;;  %v673_v15 = vmul.f32 %v641_v9, %v953_v13  ;;  %v580_v37 = vadd.f32 1e-05, %v548_v35  ;;  %v518_v41 = vsub.f32 %v454_v46, %v1227_v54  ;;  %v1322_v4 = vmul.f32 %v304_v29, %v304_v29 }
 0x106   : > { %v826_v1 = vpop.eup %825  ;;  %706 = vst.msk [vmem:[%s1254_s20 + $0x38] sm:$0xff] %vm180_vm0, %v674_v53  ;;  %v644_v40 = vmul.f32 %v824_v5, %v1234_v22  ;;  %v579_v12 = vadd.f32 1e-05, %v547_v38  ;;  %v517_v48 = vsub.f32 %v453_v28, %v1236_v62  ;;  %v400_v34 = vpop.xlane.xlu1 %399  ;;  %v1326_v50 = vmul.f32 %v303_v18, %v303_v18 }
 0x107   : > { %v397_v23 = vpop.xlane.xlu0 %396  ;;  %705 = vst.msk [vmem:[%s1254_s20 + $0x30] sm:$0xff] %vm180_vm0, %v673_v15  ;;  %v643_v13 = vmul.f32 %v826_v1, %v1234_v22  ;;  %835 = vrsqrt.f32 %v580_v37  ;;  %v550_v26 = vmax.f32 %v518_v41, 0.0  ;;  %v456_v54 = vmul.f32 0.015625, %v400_v34  ;;  %v1457_v37 = vld [vmem:[#allocation14_spill] sm:$0xff] }
 0x108   : > { %v676_v56 = vmul.f32 %v644_v40, %v960_v16  ;;  %837 = vrsqrt.f32 %v579_v12  ;;  %v549_v27 = vmax.f32 %v517_v48, 0.0  ;;  %v455_v30 = vmul.f32 0.015625, %v397_v23  ;;  %v1458_v23 = vld [vmem:[#allocation3_spill] sm:$0xff] }
 0x109   : > { %v828_v49 = vpop.eup %827  ;;  %v675_v62 = vmul.f32 %v643_v13, %v963_v17  ;;  %v582_v2 = vadd.f32 1e-05, %v550_v26  ;;  %v520_v11 = vsub.f32 %v456_v54, %v1238_v57  ;;  %v306_v53 = vmul.f32 0.015625, %v1199_v43 }
 0x10a   : > { %v830_v14 = vpop.eup %829  ;;  %708 = vst.msk [vmem:[%s1254_s20 + $0x48] sm:$0xff] %vm180_vm0, %v676_v56  ;;  %v646_v0 = vmul.f32 %v828_v49, %v1234_v22  ;;  %v581_v16 = vadd.f32 1e-05, %v549_v27  ;;  %v519_v58 = vsub.f32 %v455_v30, %v1240_v10  ;;  %v406_v61 = vpop.xlane.xlu1 %405  ;;  %v305_v41 = vmul.f32 0.015625, %v1457_v37  ;;  %v1459_v30 = vld [vmem:[#allocation4_spill] sm:$0xff] }
 0x10b   : > { %v403_v59 = vpop.xlane.xlu0 %402  ;;  %707 = vst.msk [vmem:[%s1254_s20 + $0x40] sm:$0xff] %vm180_vm0, %v675_v62  ;;  %v645_v17 = vmul.f32 %v830_v14, %v1234_v22  ;;  %839 = vrsqrt.f32 %v582_v2  ;;  %v552_v39 = vmax.f32 %v520_v11, 0.0  ;;  %v458_v57 = vmul.f32 0.015625, %v406_v61 }
 0x10c   : > { %v678_v51 = vmul.f32 %v646_v0, %v970_v20  ;;  %841 = vrsqrt.f32 %v581_v16  ;;  %v551_v42 = vmax.f32 %v519_v58, 0.0  ;;  %v457_v63 = vmul.f32 0.015625, %v403_v59 }
 0x10d   : > { %v832_v3 = vpop.eup %831  ;;  %v677_v10 = vmul.f32 %v645_v17, %v973_v21  ;;  %v584_v25 = vadd.f32 1e-05, %v552_v39  ;;  %v522_v6 = vsub.f32 %v458_v57, %v1243_v32  ;;  %v498_v27 = vmul.f32 %v306_v53, %v306_v53 }
 0x10e   : > { %v834_v36 = vpop.eup %833  ;;  %710 = vst.msk [vmem:[%s1254_s20 + $0x58] sm:$0xff] %vm180_vm0, %v678_v51  ;;  %v648_v44 = vmul.f32 %v832_v3, %v1234_v22  ;;  %v583_v20 = vadd.f32 1e-05, %v551_v42  ;;  %v521_v45 = vsub.f32 %v457_v63, %v1245_v33  ;;  %v412_v8 = vpop.xlane.xlu1 %411  ;;  %v1456_v33 = vld [vmem:[#allocation2_spill] sm:$0xff]  ;;  %v497_v2 = vmul.f32 %v305_v41, %v305_v41  ;;  %v1461_v42 = vld [vmem:[#allocation15_spill] sm:$0xff] }
 0x10f   : > { %v409_v47 = vpop.xlane.xlu0 %408  ;;  %709 = vst.msk [vmem:[%s1254_s20 + $0x50] sm:$0xff] %vm180_vm0, %v677_v10  ;;  %v647_v21 = vmul.f32 %v834_v36, %v1234_v22  ;;  %843 = vrsqrt.f32 %v584_v25  ;;  %v554_v52 = vmax.f32 %v522_v6, 0.0  ;;  %v460_v32 = vmul.f32 0.015625, %v412_v8  ;;  %v1463_v36 = vld [vmem:[#allocation16_spill] sm:$0xff] }
 0x110   : > { %v680_v60 = vmul.f32 %v648_v44, %v980_v24  ;;  %845 = vrsqrt.f32 %v583_v20  ;;  %v553_v9 = vmax.f32 %v521_v45, 0.0  ;;  %v459_v35 = vmul.f32 0.015625, %v409_v47 }
 0x111   : > { %v836_v46 = vpop.eup %835  ;;  %v679_v38 = vmul.f32 %v647_v21, %v1456_v33  ;;  %v586_v28 = vadd.f32 1e-05, %v554_v52  ;;  %v524_v5 = vsub.f32 %v460_v32, %v1270_v7  ;;  %v308_v63 = vmul.f32 0.015625, %v1461_v42  ;;  %v1470_v42 = vld [vmem:[#allocation13_spill] sm:$0xff] }
 0x112   : > { %v838_v15 = vpop.eup %837  ;;  %712 = vst.msk [vmem:[%s1254_s20 + $0x68] sm:$0xff] %vm180_vm0, %v680_v60  ;;  %v650_v1 = vmul.f32 %v836_v46, %v1234_v22  ;;  %v585_v24 = vadd.f32 1e-05, %v553_v9  ;;  %v523_v40 = vsub.f32 %v459_v35, %v1274_v55  ;;  %v418_v12 = vpop.xlane.xlu1 %417  ;;  %v307_v44 = vmul.f32 0.015625, %v1463_v36  ;;  %v1464_v60 = vld [vmem:[#allocation7_spill] sm:$0xff] }
 0x113   : > { %v415_v48 = vpop.xlane.xlu0 %414  ;;  %711 = vst.msk [vmem:[%s1254_s20 + $0x60] sm:$0xff] %vm180_vm0, %v679_v38  ;;  %v649_v43 = vmul.f32 %v838_v15, %v1234_v22  ;;  %847 = vrsqrt.f32 %v586_v28  ;;  %v556_v34 = vmax.f32 %v524_v5, 0.0  ;;  %v462_v7 = vmul.f32 0.015625, %v418_v12  ;;  %v1465_v38 = vld [vmem:[#allocation8_spill] sm:$0xff] }
 0x114   : > { %v682_v13 = vmul.f32 %v650_v1, %v1458_v23  ;;  %849 = vrsqrt.f32 %v585_v24  ;;  %v555_v26 = vmax.f32 %v523_v40, 0.0  ;;  %v461_v54 = vmul.f32 0.015625, %v415_v48 }
 0x115   : > { %v840_v56 = vpop.eup %839  ;;  %v681_v55 = vmul.f32 %v649_v43, %v1459_v30  ;;  %v588_v49 = vadd.f32 1e-05, %v556_v34  ;;  %v526_v29 = vsub.f32 %v462_v7, %v1296_v19  ;;  %v1460_v19 = vld [vmem:[#allocation5_spill] sm:$0xff]  ;;  %v500_v33 = vmul.f32 %v308_v63, %v308_v63 }
 0x116   : > { %v842_v62 = vpop.eup %841  ;;  %714 = vst.msk [vmem:[%s1254_s20 + $0x78] sm:$0xff] %vm180_vm0, %v682_v13  ;;  %v652_v11 = vmul.f32 %v840_v56, %v1234_v22  ;;  %v587_v14 = vadd.f32 1e-05, %v555_v26  ;;  %v525_v18 = vsub.f32 %v461_v54, %v1300_v31  ;;  %v424_v0 = vpop.xlane.xlu1 %423  ;;  %v1462_v31 = vld [vmem:[#allocation6_spill] sm:$0xff]  ;;  %v499_v37 = vmul.f32 %v307_v44, %v307_v44  ;;  %v1466_v7 = vld [vmem:[#allocation9_spill] sm:$0xff] }
 0x117   : > { %v421_v16 = vpop.xlane.xlu0 %420  ;;  %713 = vst.msk [vmem:[%s1254_s20 + $0x70] sm:$0xff] %vm180_vm0, %v681_v55  ;;  %v651_v58 = vmul.f32 %v842_v62, %v1234_v22  ;;  %851 = vrsqrt.f32 %v588_v49  ;;  %v558_v61 = vmax.f32 %v526_v29, 0.0  ;;  %v464_v59 = vmul.f32 0.015625, %v424_v0  ;;  %v1467_v56 = vld [vmem:[#allocation10_spill] sm:$0xff]  ;;  %v872_v44 = vld [vmem:[%s917_s15 + $0xd8] sm:$0xff] }
 0x118   : > { %v684_v17 = vmul.f32 %v652_v11, %v1460_v19  ;;  %853 = vrsqrt.f32 %v587_v14  ;;  %v557_v39 = vmax.f32 %v525_v18, 0.0  ;;  %v463_v57 = vmul.f32 0.015625, %v421_v16  ;;  %v1468_v18 = vld [vmem:[#allocation11_spill] sm:$0xff] }
 0x119   : > { %v844_v51 = vpop.eup %843  ;;  %v683_v3 = vmul.f32 %v651_v58, %v1462_v31  ;;  %v590_v10 = vadd.f32 1e-05, %v558_v61  ;;  %v528_v25 = vsub.f32 %v464_v59, %v1322_v4  ;;  %v1469_v61 = vld [vmem:[#allocation12_spill] sm:$0xff] }
 0x11a   : > { %v846_v6 = vpop.eup %845  ;;  %716 = vst.msk [vmem:[%s1254_s20 + $0x88] sm:$0xff] %vm180_vm0, %v684_v17  ;;  %v654_v20 = vmul.f32 %v844_v51, %v1234_v22  ;;  %v589_v45 = vadd.f32 1e-05, %v557_v39  ;;  %v527_v8 = vsub.f32 %v463_v57, %v1326_v50  ;;  %v430_v47 = vpop.xlane.xlu1 %429 }
 0x11b   : > { %v427_v21 = vpop.xlane.xlu0 %426  ;;  %715 = vst.msk [vmem:[%s1254_s20 + $0x80] sm:$0xff] %vm180_vm0, %v683_v3  ;;  %v653_v52 = vmul.f32 %v846_v6, %v1234_v22  ;;  %855 = vrsqrt.f32 %v590_v10  ;;  %v560_v32 = vmax.f32 %v528_v25, 0.0  ;;  %v466_v4 = vmul.f32 0.015625, %v430_v47  ;;  %v871_v3 = vld [vmem:[%s917_s15 + $0xc0] sm:$0xff] }
 0x11c   : > { %v686_v9 = vmul.f32 %v654_v20, %v1464_v60  ;;  %857 = vrsqrt.f32 %v589_v45  ;;  %v559_v35 = vmax.f32 %v527_v8, 0.0  ;;  %v465_v46 = vmul.f32 0.015625, %v427_v21  ;;  %v873_v8 = vld [vmem:[%s917_s15 + $0xd0] sm:$0xff] }
 0x11d   : > { %v848_v53 = vpop.eup %847  ;;  %v685_v50 = vmul.f32 %v653_v52, %v1465_v38  ;;  %v592_v28 = vadd.f32 1e-05, %v560_v32  ;;  %v530_v5 = vsub.f32 %v466_v4, %v498_v27  ;;  %v874_v4 = vld [vmem:[%s917_s15 + $0xe8] sm:$0xff] }
 0x11e   : > { %v850_v15 = vpop.eup %849  ;;  %718 = vst.msk [vmem:[%s1254_s20 + $0x98] sm:$0xff] %vm180_vm0, %v686_v9  ;;  %v656_v41 = vmul.f32 %v848_v53, %v1234_v22  ;;  %v591_v1 = vadd.f32 1e-05, %v559_v35  ;;  %v529_v24 = vsub.f32 %v465_v46, %v497_v2  ;;  %v436_v40 = vpop.xlane.xlu1 %435  ;;  %v875_v35 = vld [vmem:[%s917_s15 + $0xe0] sm:$0xff] }
 0x11f   : > { %v433_v12 = vpop.xlane.xlu0 %432  ;;  %717 = vst.msk [vmem:[%s1254_s20 + $0x90] sm:$0xff] %vm180_vm0, %v685_v50  ;;  %v655_v48 = vmul.f32 %v850_v15, %v1234_v22  ;;  %859 = vrsqrt.f32 %v592_v28  ;;  %v562_v43 = vmax.f32 %v530_v5, 0.0  ;;  %v468_v34 = vmul.f32 0.015625, %v436_v40  ;;  %v876_v50 = vld [vmem:[%s917_s15 + $0xf8] sm:$0xff]  ;;  %v877_v5 = vld [vmem:[%s917_s15 + $0xf0] sm:$0xff] }
 0x120   : > { %v688_v23 = vmul.f32 %v656_v41, %v1466_v7  ;;  %861 = vrsqrt.f32 %v591_v1  ;;  %v561_v13 = vmax.f32 %v529_v24, 0.0  ;;  %v467_v26 = vmul.f32 0.015625, %v433_v12 }
 0x121   : > { %v852_v54 = vpop.eup %851  ;;  %v687_v27 = vmul.f32 %v655_v48, %v1467_v56  ;;  %v594_v30 = vadd.f32 1e-05, %v562_v43  ;;  %v532_v55 = vsub.f32 %v468_v34, %v500_v33 }
 0x122   : > { %v854_v49 = vpop.eup %853  ;;  %720 = vst.msk [vmem:[%s1254_s20 + $0xa8] sm:$0xff] %vm180_vm0, %v688_v23  ;;  %v658_v29 = vmul.f32 %v852_v54, %v1234_v22  ;;  %v593_v62 = vadd.f32 1e-05, %v561_v13  ;;  %v531_v2 = vsub.f32 %v467_v26, %v499_v37 }
 0x123   : > { %719 = vst.msk [vmem:[%s1254_s20 + $0xa0] sm:$0xff] %vm180_vm0, %v687_v27  ;;  %v657_v11 = vmul.f32 %v854_v49, %v1234_v22  ;;  %863 = vrsqrt.f32 %v594_v30  ;;  %v564_v14 = vmax.f32 %v532_v55, 0.0 }
 0x124   : > { %v690_v0 = vmul.f32 %v658_v29, %v1468_v18  ;;  %865 = vrsqrt.f32 %v593_v62  ;;  %v563_v16 = vmax.f32 %v531_v2, 0.0 }
 0x125   : > { %v856_v58 = vpop.eup %855  ;;  %v689_v59 = vmul.f32 %v657_v11, %v1469_v61  ;;  %v596_v19 = vadd.f32 1e-05, %v564_v14 }
 0x126   : > { %v858_v17 = vpop.eup %857  ;;  %722 = vst.msk [vmem:[%s1254_s20 + $0xb8] sm:$0xff] %vm180_vm0, %v690_v0  ;;  %v660_v39 = vmul.f32 %v856_v58, %v1234_v22  ;;  %v595_v57 = vadd.f32 1e-05, %v563_v16 }
 0x127   : > { %721 = vst.msk [vmem:[%s1254_s20 + $0xb0] sm:$0xff] %vm180_vm0, %v689_v59  ;;  %v659_v51 = vmul.f32 %v858_v17, %v1234_v22  ;;  %867 = vrsqrt.f32 %v596_v19 }
 0x128   : > { %v692_v63 = vmul.f32 %v660_v39, %v1470_v42  ;;  %869 = vrsqrt.f32 %v595_v57 }
 0x129   : > { %v860_v31 = vpop.eup %859  ;;  %v691_v10 = vmul.f32 %v871_v3, %v659_v51 }
 0x12a   : > { %v862_v25 = vpop.eup %861  ;;  %724 = vst.msk [vmem:[%s1254_s20 + $0xc8] sm:$0xff] %vm180_vm0, %v692_v63  ;;  %v662_v6 = vmul.f32 %v860_v31, %v1234_v22 }
 0x12b   : > { %723 = vst.msk [vmem:[%s1254_s20 + $0xc0] sm:$0xff] %vm180_vm0, %v691_v10  ;;  %v661_v36 = vmul.f32 %v862_v25, %v1234_v22 }
 0x12c   : > { %v694_v20 = vmul.f32 %v872_v44, %v662_v6 }
 0x12d   : > { %v864_v45 = vpop.eup %863  ;;  %v693_v47 = vmul.f32 %v873_v8, %v661_v36 }
 0x12e   : > { %v866_v21 = vpop.eup %865  ;;  %726 = vst.msk [vmem:[%s1254_s20 + $0xd8] sm:$0xff] %vm180_vm0, %v694_v20  ;;  %v664_v52 = vmul.f32 %v864_v45, %v1234_v22 }
 0x12f   : > { %725 = vst.msk [vmem:[%s1254_s20 + $0xd0] sm:$0xff] %vm180_vm0, %v693_v47  ;;  %v663_v32 = vmul.f32 %v866_v21, %v1234_v22 }
 0x130   : > { %v696_v60 = vmul.f32 %v874_v4, %v664_v52 }
 0x131   : > { %v868_v9 = vpop.eup %867  ;;  %v695_v46 = vmul.f32 %v875_v35, %v663_v32 }
 0x132   : > { %v870_v53 = vpop.eup %869  ;;  %728 = vst.msk [vmem:[%s1254_s20 + $0xe8] sm:$0xff] %vm180_vm0, %v696_v60  ;;  %v666_v33 = vmul.f32 %v868_v9, %v1234_v22 }
 0x133   : > { %727 = vst.msk [vmem:[%s1254_s20 + $0xe0] sm:$0xff] %vm180_vm0, %v695_v46  ;;  %v665_v38 = vmul.f32 %v870_v53, %v1234_v22 }
 0x134   : > { %v698_v28 = vmul.f32 %v876_v50, %v666_v33 }
 0x135   : > { %v697_v15 = vmul.f32 %v877_v5, %v665_v38 }
 0x136   : > { %730 = vst.msk [vmem:[%s1254_s20 + $0xf8] sm:$0xff] %vm180_vm0, %v698_v28 }
 0x137   : > { %729 = vst.msk [vmem:[%s1254_s20 + $0xf0] sm:$0xff] %vm180_vm0, %v697_v15 }
 0x138 PF: > { %s12_s9 = sadd.s32 1, %s884_s9  }
 0x139   : > { %p9_p4 = scmp.ge.s32.totalorder %s12_s9, 4  }
 0x13b   :  { %11 = sbr.rel (!%p9_p4) target bundleno = 1 (0x1), region = 58 }

</bundles_post_ra>
